<compile_context>
chip_gen: v6e
topology: v6e:2x2x1
jax: 0.10.0
libtpu: 0.0.40
codegen_flags: <defaults>
</compile_context>

<pallas_src>
import functools

import jax
import jax.numpy as jnp
from jax.experimental import pallas as pl
from jax.experimental.pallas import tpu as pltpu

K_IN = 784       # 28*28 (unpadded K; pad only exists on no side now)
H1 = 256
H2 = 128
N_OUT = 10
N_PAD = 128      # lane-dense output width (logits padded 10 -> 128)


def mlp_kernel(x_ref, w1_ref, b1_ref, w2_ref, b2_ref, w3_ref, b3_ref, o_ref,
               h1_ref):
    cdt = w1_ref.dtype  # MXU input dtype (bf16 by default); accumulation is f32.

    # fc1 + ReLU  (x: [tile_b, 784] already in compute dtype; W1: [784, 256])
    h1 = jnp.dot(x_ref[...], w1_ref[...],
                 preferred_element_type=jnp.float32) + b1_ref[...]
    h1_ref[...] = jnp.maximum(h1, 0.0).astype(cdt)

    # fc2 + ReLU  (W2: [256, 128]); h2 is small -> keep as a local value.
    h2 = jnp.dot(h1_ref[...], w2_ref[...],
                 preferred_element_type=jnp.float32) + b2_ref[...]
    h2 = jnp.maximum(h2, 0.0).astype(cdt)

    # fc3 (no activation); W3/b3 zero-padded to 128 lanes -> full unmasked store.
    out = jnp.dot(h2, w3_ref[...],
                  preferred_element_type=jnp.float32) + b3_ref[...]
    o_ref[...] = out.astype(o_ref.dtype)


def _round_up(a, m):
    return (a + m - 1) // m * m


@functools.partial(jax.jit, static_argnames=("tile_b_max", "compute_dtype"))
def simple_mlp_forward(x_nchw, params, *, tile_b_max=512,
                       compute_dtype=jnp.bfloat16):
    """x_nchw: [B, 1, 28, 28] float32 -> logits [B, 10] float32."""
    w1, b1, w2, b2, w3, b3 = params
    B = x_nchw.shape[0]

    # Same as torch.flatten(x, 1), plus a single cast to the MXU input dtype.
    x = x_nchw.reshape(B, -1).astype(compute_dtype)
    assert x.shape[1] == K_IN

    # --- batch tiling (no K pad; avoid batch padding where possible) ----------
    if B <= tile_b_max:
        # One full-batch block. Block dim == full array dim is always legal, so
        # no wrapper-side batch pad / extra HBM pass at all.
        tile_b = B
        grid_b = 1
        B_pad = B
    else:
        # >= 2 grid steps (shards across both TensorCores on v7x). Round tile_b
        # to 16 (bf16 sublane packing) and size it so the pad is < 16 rows/step.
        grid_b = pl.cdiv(B, tile_b_max)
        tile_b = _round_up(pl.cdiv(B, grid_b), 16)
        B_pad = grid_b * tile_b
        if B_pad != B:
            x = jnp.pad(x, ((0, B_pad - B), (0, 0)))  # tiny bf16 pad (< 16 rows/step)

    # Weights in the MXU input dtype (f32 accumulation inside the kernel).
    w1c = w1.astype(compute_dtype)
    w2c = w2.astype(compute_dtype)
    # fc3 output lanes: 10 -> 128 (zero-padded columns; sliced off at the end).
    w3p = jnp.pad(w3, ((0, 0), (0, N_PAD - N_OUT))).astype(compute_dtype)
    b3p = jnp.pad(b3, ((0, 0), (0, N_PAD - N_OUT)))

    out = pl.pallas_call(
        mlp_kernel,
        out_shape=jax.ShapeDtypeStruct((B_pad, N_PAD), jnp.float32),
        grid_spec=pltpu.PrefetchScalarGridSpec(
            num_scalar_prefetch=0,
            grid=(grid_b,),
            in_specs=[
                pl.BlockSpec((tile_b, K_IN), lambda i: (i, 0)),   # x tile (bf16)
                pl.BlockSpec((K_IN, H1), lambda i: (0, 0)),       # W1 (resident)
                pl.BlockSpec((1, H1), lambda i: (0, 0)),          # b1
                pl.BlockSpec((H1, H2), lambda i: (0, 0)),         # W2 (resident)
                pl.BlockSpec((1, H2), lambda i: (0, 0)),          # b2
                pl.BlockSpec((H2, N_PAD), lambda i: (0, 0)),      # W3 padded (resident)
                pl.BlockSpec((1, N_PAD), lambda i: (0, 0)),       # b3 padded
            ],
            out_specs=pl.BlockSpec((tile_b, N_PAD), lambda i: (i, 0)),
            scratch_shapes=[
                pltpu.VMEM((tile_b, H1), compute_dtype),   # h1 in compute dtype
            ],
        ),
        compiler_params=pltpu.CompilerParams(
            dimension_semantics=("parallel",),
        ),
    )(x, w1c, b1, w2c, b2, w3p, b3p)

    # Drop any batch padding and the 118 zero logit columns.
    return out[:B, :N_OUT]


def init_params(key):
    """Deterministic init mirroring nn.Linear shapes (weights stored as [in, out])."""
    k1, k2, k3, k4, k5, k6 = jax.random.split(key, 6)

    def lin(kw, kb, fan_in, fan_out):
        bound = 1.0 / jnp.sqrt(fan_in)
        w = jax.random.uniform(kw, (fan_in, fan_out), jnp.float32, -bound, bound)
        b = jax.random.uniform(kb, (1, fan_out), jnp.float32, -bound, bound)
        return w, b

    w1, b1 = lin(k1, k2, K_IN, H1)
    w2, b2 = lin(k3, k4, H1, H2)
    w3, b3 = lin(k5, k6, H2, N_OUT)
    return (w1, b1, w2, b2, w3, b3)


def reference_forward(x_nchw, params, compute_dtype=jnp.float32):
    """Pure-JAX reference. compute_dtype controls the dot-input precision."""
    w1, b1, w2, b2, w3, b3 = params
    x = x_nchw.reshape(x_nchw.shape[0], -1)

    def lin(a, w, b):
        return jnp.dot(a.astype(compute_dtype), w.astype(compute_dtype),
                       preferred_element_type=jnp.float32) + b

    h1 = jax.nn.relu(lin(x, w1, b1))
    h2 = jax.nn.relu(lin(h1, w2, b2))
    return lin(h2, w3, b3)


if __name__ == "__main__":
    key = jax.random.PRNGKey(0)
    kx, kp = jax.random.split(key)

    B = 64  # MNIST-like input 1x28x28 -> flatten to 784
    x = jax.random.normal(kx, (B, 1, 28, 28), jnp.float32)
    params = init_params(kp)

    out = simple_mlp_forward(x, params)
    out = jax.block_until_ready(out)
    assert out.shape == (B, N_OUT)

    # Precision-matched reference (bf16 dot inputs, f32 accumulation).
    ref_bf16 = reference_forward(x, params, compute_dtype=jnp.bfloat16)
    assert jnp.allclose(out, ref_bf16, atol=1e-2, rtol=1e-2), \
        "mismatch vs bf16-matched reference"

    # Sanity check against the exact f32 PyTorch-equivalent forward.
    ref_f32 = reference_forward(x, params, compute_dtype=jnp.float32)
    assert jnp.allclose(out, ref_f32, atol=1e-1, rtol=1e-1), \
        "mismatch vs f32 reference"

    print("KERNEL_OK")
</pallas_src>

<mosaic_0001>
module attributes {stable_mosaic.version = 11 : i64} {
  func.func @mlp_kernel(%arg0: i32, %arg1: memref<64x784xbf16, #tpu.memory_space<vmem>>, %arg2: memref<784x256xbf16, #tpu.memory_space<vmem>>, %arg3: memref<1x256xf32, #tpu.memory_space<vmem>>, %arg4: memref<256x128xbf16, #tpu.memory_space<vmem>>, %arg5: memref<1x128xf32, #tpu.memory_space<vmem>>, %arg6: memref<128x128xbf16, #tpu.memory_space<vmem>>, %arg7: memref<1x128xf32, #tpu.memory_space<vmem>>, %arg8: memref<64x128xf32, #tpu.memory_space<vmem>>, %arg9: memref<64x256xbf16, #tpu.memory_space<vmem>>) attributes {dimension_semantics = [#tpu.dimension_semantics<parallel>], iteration_bounds = array<i64: 1>, scalar_prefetch = 0 : i64, scratch_operands = 1 : i64, tpu.core_type = #tpu.core_type<tc>, window_params = [{transform_indices = @transform_0, window_bounds = array<i64: 64, 784>}, {pipeline_mode = #tpu.pipeline_mode<synchronous>, transform_indices = @transform_1, window_bounds = array<i64: 784, 256>}, {pipeline_mode = #tpu.pipeline_mode<synchronous>, transform_indices = @transform_2, window_bounds = array<i64: 1, 256>}, {pipeline_mode = #tpu.pipeline_mode<synchronous>, transform_indices = @transform_3, window_bounds = array<i64: 256, 128>}, {pipeline_mode = #tpu.pipeline_mode<synchronous>, transform_indices = @transform_4, window_bounds = array<i64: 1, 128>}, {pipeline_mode = #tpu.pipeline_mode<synchronous>, transform_indices = @transform_5, window_bounds = array<i64: 128, 128>}, {pipeline_mode = #tpu.pipeline_mode<synchronous>, transform_indices = @transform_6, window_bounds = array<i64: 1, 128>}, {transform_indices = @transform_7, window_bounds = array<i64: 64, 128>}]} {
    %c0 = arith.constant 0 : index
    %c0_0 = arith.constant 0 : index
    %0 = vector.load %arg1[%c0, %c0_0] : memref<64x784xbf16, #tpu.memory_space<vmem>>, vector<64x784xbf16>
    %c0_1 = arith.constant 0 : index
    %c0_2 = arith.constant 0 : index
    %1 = vector.load %arg2[%c0_1, %c0_2] : memref<784x256xbf16, #tpu.memory_space<vmem>>, vector<784x256xbf16>
    %cst = arith.constant dense<0.000000e+00> : vector<64x256xf32>
    %2 = tpu.matmul %0, %1, %cst {dimension_numbers = #tpu.dot_dimension_numbers<[1], [0], [0], [1], [0, 0, 1, 1], [], []>} : vector<64x784xbf16>, vector<784x256xbf16>, vector<64x256xf32> -> vector<64x256xf32>
    %c0_3 = arith.constant 0 : index
    %c0_4 = arith.constant 0 : index
    %3 = vector.load %arg3[%c0_3, %c0_4] : memref<1x256xf32, #tpu.memory_space<vmem>>, vector<1x256xf32>
    %4 = vector.broadcast %3 : vector<1x256xf32> to vector<64x256xf32>
    %5 = arith.addf %2, %4 : vector<64x256xf32>
    %cst_5 = arith.constant 0.000000e+00 : f32
    %6 = vector.broadcast %cst_5 : f32 to vector<64x256xf32>
    %7 = arith.maximumf %5, %6 : vector<64x256xf32>
    %8 = arith.truncf %7 : vector<64x256xf32> to vector<64x256xbf16>
    %c0_6 = arith.constant 0 : index
    %c0_7 = arith.constant 0 : index
    %9 = vector.load %arg9[%c0_6, %c0_7] : memref<64x256xbf16, #tpu.memory_space<vmem>>, vector<64x256xbf16>
    tpu.vector_store %arg9[%c0_6, %c0_7], %8 {strides = array<i32>} : memref<64x256xbf16, #tpu.memory_space<vmem>>, vector<64x256xbf16>,
    %c0_8 = arith.constant 0 : index
    %c0_9 = arith.constant 0 : index
    %10 = vector.load %arg9[%c0_8, %c0_9] : memref<64x256xbf16, #tpu.memory_space<vmem>>, vector<64x256xbf16>
    %c0_10 = arith.constant 0 : index
    %c0_11 = arith.constant 0 : index
    %11 = vector.load %arg4[%c0_10, %c0_11] : memref<256x128xbf16, #tpu.memory_space<vmem>>, vector<256x128xbf16>
    %cst_12 = arith.constant dense<0.000000e+00> : vector<64x128xf32>
    %12 = tpu.matmul %10, %11, %cst_12 {dimension_numbers = #tpu.dot_dimension_numbers<[1], [0], [0], [1], [0, 0, 1, 1], [], []>} : vector<64x256xbf16>, vector<256x128xbf16>, vector<64x128xf32> -> vector<64x128xf32>
    %c0_13 = arith.constant 0 : index
    %c0_14 = arith.constant 0 : index
    %13 = vector.load %arg5[%c0_13, %c0_14] : memref<1x128xf32, #tpu.memory_space<vmem>>, vector<1x128xf32>
    %14 = vector.broadcast %13 : vector<1x128xf32> to vector<64x128xf32>
    %15 = arith.addf %12, %14 : vector<64x128xf32>
    %cst_15 = arith.constant 0.000000e+00 : f32
    %16 = vector.broadcast %cst_15 : f32 to vector<64x128xf32>
    %17 = arith.maximumf %15, %16 : vector<64x128xf32>
    %18 = arith.truncf %17 : vector<64x128xf32> to vector<64x128xbf16>
    %c0_16 = arith.constant 0 : index
    %c0_17 = arith.constant 0 : index
    %19 = vector.load %arg6[%c0_16, %c0_17] : memref<128x128xbf16, #tpu.memory_space<vmem>>, vector<128x128xbf16>
    %cst_18 = arith.constant dense<0.000000e+00> : vector<64x128xf32>
    %20 = tpu.matmul %18, %19, %cst_18 {dimension_numbers = #tpu.dot_dimension_numbers<[1], [0], [0], [1], [0, 0, 1, 1], [], []>} : vector<64x128xbf16>, vector<128x128xbf16>, vector<64x128xf32> -> vector<64x128xf32>
    %c0_19 = arith.constant 0 : index
    %c0_20 = arith.constant 0 : index
    %21 = vector.load %arg7[%c0_19, %c0_20] : memref<1x128xf32, #tpu.memory_space<vmem>>, vector<1x128xf32>
    %22 = vector.broadcast %21 : vector<1x128xf32> to vector<64x128xf32>
    %23 = arith.addf %20, %22 : vector<64x128xf32>
    %c0_21 = arith.constant 0 : index
    %c0_22 = arith.constant 0 : index
    %24 = vector.load %arg8[%c0_21, %c0_22] : memref<64x128xf32, #tpu.memory_space<vmem>>, vector<64x128xf32>
    tpu.vector_store %arg8[%c0_21, %c0_22], %23 {strides = array<i32>} : memref<64x128xf32, #tpu.memory_space<vmem>>, vector<64x128xf32>,
    return
  }
  func.func @transform_0(%arg0: i32) -> (i32, i32) {
    %c0_i32 = arith.constant 0 : i32
    %c0_i32_0 = arith.constant 0 : i32
    return %arg0, %c0_i32 : i32, i32
  }
  func.func @transform_1(%arg0: i32) -> (i32, i32) {
    %c0_i32 = arith.constant 0 : i32
    %c0_i32_0 = arith.constant 0 : i32
    %c0_i32_1 = arith.constant 0 : i32
    return %c0_i32, %c0_i32_0 : i32, i32
  }
  func.func @transform_2(%arg0: i32) -> (i32, i32) {
    %c0_i32 = arith.constant 0 : i32
    %c0_i32_0 = arith.constant 0 : i32
    %c0_i32_1 = arith.constant 0 : i32
    return %c0_i32, %c0_i32_0 : i32, i32
  }
  func.func @transform_3(%arg0: i32) -> (i32, i32) {
    %c0_i32 = arith.constant 0 : i32
    %c0_i32_0 = arith.constant 0 : i32
    %c0_i32_1 = arith.constant 0 : i32
    return %c0_i32, %c0_i32_0 : i32, i32
  }
  func.func @transform_4(%arg0: i32) -> (i32, i32) {
    %c0_i32 = arith.constant 0 : i32
    %c0_i32_0 = arith.constant 0 : i32
    %c0_i32_1 = arith.constant 0 : i32
    return %c0_i32, %c0_i32_0 : i32, i32
  }
  func.func @transform_5(%arg0: i32) -> (i32, i32) {
    %c0_i32 = arith.constant 0 : i32
    %c0_i32_0 = arith.constant 0 : i32
    %c0_i32_1 = arith.constant 0 : i32
    return %c0_i32, %c0_i32_0 : i32, i32
  }
  func.func @transform_6(%arg0: i32) -> (i32, i32) {
    %c0_i32 = arith.constant 0 : i32
    %c0_i32_0 = arith.constant 0 : i32
    %c0_i32_1 = arith.constant 0 : i32
    return %c0_i32, %c0_i32_0 : i32, i32
  }
  func.func @transform_7(%arg0: i32) -> (i32, i32) {
    %c0_i32 = arith.constant 0 : i32
    %c0_i32_0 = arith.constant 0 : i32
    return %arg0, %c0_i32 : i32, i32
  }
}

</mosaic_0001>

<bundles_post_ra>
// kernel: simple_mlp_forward.1
= control target key start
LH: loop header
LB: loop body
LE: loop exit
PB: predicated region body
PF: predicated region fallthrough
CT: control target
= control target key end

     0   :  { %vm799_vm0 = vcmask 130048   ;;  %s2705_s1 = inlined_call_operand.vmem [shape: bf16[784,256], index: 1, kind: input, shape index: {}]   ;;  %s2706_s0 = inlined_call_operand.vmem [shape: bf16[64,784], index: 0, kind: input, shape index: {}]   ;;  %s2707_s3 = inlined_call_operand.vmem [shape: bf16[256,128], index: 3, kind: input, shape index: {}]   ;;  %s2708_s5 = inlined_call_operand.vmem [shape: bf16[128,128], index: 5, kind: input, shape index: {}]   ;;  %s2709_s2 = inlined_call_operand.vmem [shape: f32[1,256], index: 2, kind: input, shape index: {}]   ;;  %s2710_s4 = inlined_call_operand.vmem [shape: f32[1,128], index: 4, kind: input, shape index: {}]   ;;  %s2711_s6 = inlined_call_operand.vmem [shape: f32[1,128], index: 6, kind: input, shape index: {}]   ;;  %s2712_s7 = inlined_call_operand.vmem [shape: f32[64,128], index: 7, kind: output, shape index: {}]  }
   0x1   :  { %v1865_v0 = vld [vmem:[%s2705_s1 + $0x74] ss:$8 sps:$4 sm:$0xff]   ;;  %v1867_v1 = vld [vmem:[%s2705_s1 + $0x70] ss:$8 sps:$4 sm:$0xff]   ;;  %v1871_v4 = vld [vmem:[%s2705_s1 + $0x64] ss:$8 sps:$4 sm:$0xff]  }
   0x2   :  { %812 = vmatprep.subr.bf16.mxu0 %v1865_v0  ;;  %v1868_v2 = vld [vmem:[%s2705_s1 + $0x174] ss:$8 sps:$4 sm:$0xff]   ;;  %v1870_v3 = vld [vmem:[%s2705_s1 + $0x170] ss:$8 sps:$4 sm:$0xff]   ;;  %v1873_v5 = vld [vmem:[%s2705_s1 + $0x60] ss:$8 sps:$4 sm:$0xff]  }
   0x3   :  { %813 = vmatpush1.bf16.msra.mxu0 %v1867_v1  ;;  %885 = vmatprep.subr.bf16.mxu1 %v1868_v2  ;;  %v1874_v6 = vld [vmem:[%s2705_s1 + $0x164] ss:$8 sps:$4 sm:$0xff]   ;;  %v1876_v7 = vld [vmem:[%s2705_s1 + $0x160] ss:$8 sps:$4 sm:$0xff]   ;;  %v1877_v8 = vld [vmem:[%s2705_s1 + $0x54] ss:$8 sps:$4 sm:$0xff]  }
   0x4   :  { %886 = vmatpush1.bf16.msra.mxu1 %v1870_v3  ;;  %814 = vmatprep.subr.bf16.mxu0 %v1871_v4  ;;  %v1879_v9 = vld [vmem:[%s2705_s1 + $0x50] ss:$8 sps:$4 sm:$0xff]   ;;  %v1880_v10 = vld [vmem:[%s2705_s1 + $0x154] ss:$8 sps:$4 sm:$0xff]   ;;  %v1883_v11 = vld [vmem:[%s2705_s1 + $0x44] ss:$8 sps:$4 sm:$0xff]  }
   0x5   :  { %887 = vmatprep.subr.bf16.mxu1 %v1874_v6  ;;  %v1882_v12 = vld [vmem:[%s2705_s1 + $0x150] ss:$8 sps:$4 sm:$0xff]   ;;  %v1886_v13 = vld [vmem:[%s2705_s1 + $0x144] ss:$8 sps:$4 sm:$0xff]   ;;  %v1885_v14 = vld [vmem:[%s2705_s1 + $0x40] ss:$8 sps:$4 sm:$0xff]  }
   0x6   :  { %v1889_v15 = vld [vmem:[%s2705_s1 + $0x34] ss:$8 sps:$4 sm:$0xff]   ;;  %v1888_v16 = vld [vmem:[%s2705_s1 + $0x140] ss:$8 sps:$4 sm:$0xff]   ;;  %v1891_v18 = vld [vmem:[%s2705_s1 + $0x30] ss:$8 sps:$4 sm:$0xff]  }
   0x7   :  { %815 = vmatpush1.bf16.msra.mxu0 %v1873_v5  ;;  %v1892_v17 = vld [vmem:[%s2705_s1 + $0x134] ss:$8 sps:$4 sm:$0xff]   ;;  %v1895_v19 = vld [vmem:[%s2705_s1 + $0x24] ss:$8 sps:$4 sm:$0xff]   ;;  %v1894_v20 = vld [vmem:[%s2705_s1 + $0x130] ss:$8 sps:$4 sm:$0xff]  }
   0x8   :  { %816 = vmatprep.subr.bf16.mxu0 %v1877_v8  ;;  %888 = vmatpush1.bf16.msra.mxu1 %v1876_v7  ;;  %v1898_v21 = vld [vmem:[%s2705_s1 + $0x124] ss:$8 sps:$4 sm:$0xff]   ;;  %v1897_v22 = vld [vmem:[%s2705_s1 + $0x20] ss:$8 sps:$4 sm:$0xff]   ;;  %v1901_v23 = vld [vmem:[%s2705_s1 + $0x14] ss:$8 sps:$4 sm:$0xff]  }
   0x9   :  { %889 = vmatprep.subr.bf16.mxu1 %v1880_v10  ;;  %v1900_v24 = vld [vmem:[%s2705_s1 + $0x120] ss:$8 sps:$4 sm:$0xff]   ;;  %v1904_v25 = vld [vmem:[%s2705_s1 + $0x114] ss:$8 sps:$4 sm:$0xff]   ;;  %v1903_v26 = vld [vmem:[%s2705_s1 + $0x10] ss:$8 sps:$4 sm:$0xff]  }
   0xa   :  { %v1907_v27 = vld [vmem:[%s2705_s1 + $0x4] ss:$8 sps:$4 sm:$0xff]   ;;  %v1906_v28 = vld [vmem:[%s2705_s1 + $0x110] ss:$8 sps:$4 sm:$0xff]   ;;  %v1909_v30 = vld [vmem:[%s2705_s1] ss:$8 sps:$4 sm:$0xff]  }
   0xb   :  { %817 = vmatpush1.bf16.msra.mxu0 %v1879_v9  ;;  %v1910_v29 = vld [vmem:[%s2705_s1 + $0x104] ss:$8 sps:$4 sm:$0xff]   ;;  %v1913_v31 = vld [vmem:[%s2705_s1 + $0xf4] ss:$8 sps:$4 sm:$0xff]   ;;  %v1912_v32 = vld [vmem:[%s2705_s1 + $0x100] ss:$8 sps:$4 sm:$0xff]  }
   0xc   :  { %818 = vmatprep.subr.bf16.mxu0 %v1883_v11  ;;  %890 = vmatpush1.bf16.msra.mxu1 %v1882_v12  ;;  %v1916_v33 = vld [vmem:[%s2705_s1 + $0x1f4] ss:$8 sps:$4 sm:$0xff]   ;;  %v1915_v34 = vld [vmem:[%s2705_s1 + $0xf0] ss:$8 sps:$4 sm:$0xff]   ;;  %v1919_v35 = vld [vmem:[%s2705_s1 + $0xe4] ss:$8 sps:$4 sm:$0xff]  }
   0xd   :  { %891 = vmatprep.subr.bf16.mxu1 %v1886_v13  ;;  %v1918_v36 = vld [vmem:[%s2705_s1 + $0x1f0] ss:$8 sps:$4 sm:$0xff]   ;;  %v1922_v37 = vld [vmem:[%s2705_s1 + $0x1e4] ss:$8 sps:$4 sm:$0xff]   ;;  %v1921_v38 = vld [vmem:[%s2705_s1 + $0xe0] ss:$8 sps:$4 sm:$0xff]  }
   0xe   :  { %v1925_v39 = vld [vmem:[%s2705_s1 + $0xd4] ss:$8 sps:$4 sm:$0xff]   ;;  %v1924_v40 = vld [vmem:[%s2705_s1 + $0x1e0] ss:$8 sps:$4 sm:$0xff]   ;;  %v1927_v42 = vld [vmem:[%s2705_s1 + $0xd0] ss:$8 sps:$4 sm:$0xff]  }
   0xf   :  { %819 = vmatpush1.bf16.msra.mxu0 %v1885_v14  ;;  %v1928_v41 = vld [vmem:[%s2705_s1 + $0x1d4] ss:$8 sps:$4 sm:$0xff]   ;;  %v1931_v43 = vld [vmem:[%s2705_s1 + $0xc4] ss:$8 sps:$4 sm:$0xff]   ;;  %v1930_v44 = vld [vmem:[%s2705_s1 + $0x1d0] ss:$8 sps:$4 sm:$0xff]  }
  0x10   :  { %820 = vmatprep.subr.bf16.mxu0 %v1889_v15  ;;  %892 = vmatpush1.bf16.msra.mxu1 %v1888_v16  ;;  %v1934_v45 = vld [vmem:[%s2705_s1 + $0x1c4] ss:$8 sps:$4 sm:$0xff]   ;;  %v1933_v46 = vld [vmem:[%s2705_s1 + $0xc0] ss:$8 sps:$4 sm:$0xff]   ;;  %v1937_v48 = vld [vmem:[%s2705_s1 + $0xb4] ss:$8 sps:$4 sm:$0xff]  }
  0x11   :  { %893 = vmatprep.subr.bf16.mxu1 %v1892_v17  ;;  %v1962_v47 = vld [vmem:[%s2706_s0 + $0x4] ss:$28 sps:$4 sm:$0xff]   ;;  %v1940_v50 = vld [vmem:[%s2705_s1 + $0x1b4] ss:$8 sps:$4 sm:$0xff]   ;;  %v1969_v51 = vld [vmem:[%s2706_s0 + $0xc] ss:$28 sps:$4 sm:$0xff]  }
  0x12   :  { %v1936_v49 = vld [vmem:[%s2705_s1 + $0x1c0] ss:$8 sps:$4 sm:$0xff]   ;;  %844 = vmatprep.mubr.bf16.mxu0 %v1962_v47  ;;  %v1939_v52 = vld [vmem:[%s2705_s1 + $0xb0] ss:$8 sps:$4 sm:$0xff]   ;;  %v1943_v53 = vld [vmem:[%s2705_s1 + $0xa4] ss:$8 sps:$4 sm:$0xff]   ;;  %917 = vmatprep.mubr.bf16.mxu1 %v1969_v51 }
  0x13   :  { %821 = vmatpush1.bf16.msra.mxu0 %v1891_v18  ;;  %v1942_v54 = vld [vmem:[%s2705_s1 + $0x1b0] ss:$8 sps:$4 sm:$0xff]   ;;  %v1946_v55 = vld [vmem:[%s2705_s1 + $0x1a4] ss:$8 sps:$4 sm:$0xff]   ;;  %v1945_v56 = vld [vmem:[%s2705_s1 + $0xa0] ss:$8 sps:$4 sm:$0xff]  }
  0x14   :  { %822 = vmatprep.subr.bf16.mxu0 %v1895_v19  ;;  %894 = vmatpush1.bf16.msra.mxu1 %v1894_v20  ;;  %v1949_v57 = vld [vmem:[%s2705_s1 + $0x94] ss:$8 sps:$4 sm:$0xff]   ;;  %v1948_v58 = vld [vmem:[%s2705_s1 + $0x1a0] ss:$8 sps:$4 sm:$0xff]   ;;  %v1951_v60 = vld [vmem:[%s2705_s1 + $0x90] ss:$8 sps:$4 sm:$0xff]  }
  0x15   :  { %895 = vmatprep.subr.bf16.mxu1 %v1898_v21  ;;  %v1952_v59 = vld [vmem:[%s2705_s1 + $0x194] ss:$8 sps:$4 sm:$0xff]   ;;  %v1955_v61 = vld [vmem:[%s2705_s1 + $0x84] ss:$8 sps:$4 sm:$0xff]   ;;  %v1954_v62 = vld [vmem:[%s2705_s1 + $0x190] ss:$8 sps:$4 sm:$0xff]  }
  0x16   :  { %v1958_v63 = vld [vmem:[%s2705_s1 + $0x184] ss:$8 sps:$4 sm:$0xff]   ;;  %v1957_v0 = vld [vmem:[%s2705_s1 + $0x80] ss:$8 sps:$4 sm:$0xff]   ;;  %v1966_v3 = vld [vmem:[%s2705_s1 + $0x274] ss:$8 sps:$4 sm:$0xff]  }
  0x17   :  { %823 = vmatpush1.bf16.msra.mxu0 %v1897_v22  ;;  %v1963_v1 = vld [vmem:[%s2705_s1 + $0x180] ss:$8 sps:$4 sm:$0xff]   ;;  %v1964_v4 = vld [vmem:[%s2705_s1 + $0x270] ss:$8 sps:$4 sm:$0xff]   ;;  %v1998_v6 = vld [vmem:[%s2705_s1 + $0x304] ss:$8 sps:$4 sm:$0xff]  }
  0x18   :  { %824 = vmatprep.subr.bf16.mxu0 %v1901_v23  ;;  %896 = vmatpush1.bf16.msra.mxu1 %v1900_v24  ;;  %v1960_v2 = vld [vmem:[%s2706_s0] ss:$28 sps:$4 sm:$0xff]   ;;  %v1967_v5 = vld [vmem:[%s2706_s0 + $0x8] ss:$28 sps:$4 sm:$0xff]   ;;  %v1973_v13 = vld [vmem:[%s2705_s1 + $0x250] ss:$8 sps:$4 sm:$0xff]  }
  0x19   :  { %897 = vmatprep.subr.bf16.mxu1 %v1904_v25  ;;  %v1972_v7 = vld [vmem:[%s2705_s1 + $0x264] ss:$8 sps:$4 sm:$0xff]   ;;  %v1994_v8 = vld [vmem:[%s2706_s0 + $0x3c] ss:$28 sps:$4 sm:$0xff]   ;;  %v1996_v9 = vld [vmem:[%s2705_s1 + $0x300] ss:$8 sps:$4 sm:$0xff]  }
  0x1a   :  { %v2000_v10 = vld [vmem:[%s2706_s0 + $0x44] ss:$28 sps:$4 sm:$0xff]   ;;  %v1975_v12 = vld [vmem:[%s2705_s1 + $0x254] ss:$8 sps:$4 sm:$0xff]   ;;  %v1979_v21 = vld [vmem:[%s2705_s1 + $0x230] ss:$8 sps:$4 sm:$0xff]  }
  0x1b   :  { %825 = vmatpush1.bf16.msra.mxu0 %v1903_v26  ;;  %v1970_v11 = vld [vmem:[%s2705_s1 + $0x260] ss:$8 sps:$4 sm:$0xff]   ;;  %v1999_v14 = vld [vmem:[%s2706_s0 + $0x38] ss:$28 sps:$4 sm:$0xff]   ;;  %v1978_v15 = vld [vmem:[%s2705_s1 + $0x244] ss:$8 sps:$4 sm:$0xff]  }
  0x1c   :  { %826 = vmatprep.subr.bf16.mxu0 %v1907_v27  ;;  %898 = vmatpush1.bf16.msra.mxu1 %v1906_v28  ;;  %v2009_v16 = vld [vmem:[%s2706_s0 + $0x74] ss:$28 sps:$4 sm:$0xff]   ;;  %v2002_v17 = vld [vmem:[%s2706_s0 + $0x40] ss:$28 sps:$4 sm:$0xff]   ;;  %v2021_v23 = vld [vmem:[%s2706_s0 + $0xac] ss:$28 sps:$4 sm:$0xff]  }
  0x1d   :  { %899 = vmatprep.subr.bf16.mxu1 %v1910_v29  ;;  %v2012_v18 = vld [vmem:[%s2706_s0 + $0x7c] ss:$28 sps:$4 sm:$0xff]   ;;  %v1976_v19 = vld [vmem:[%s2705_s1 + $0x240] ss:$8 sps:$4 sm:$0xff]   ;;  %v2011_v22 = vld [vmem:[%s2706_s0 + $0x70] ss:$28 sps:$4 sm:$0xff]  }
  0x1e   :  { %v1981_v20 = vld [vmem:[%s2705_s1 + $0x234] ss:$8 sps:$4 sm:$0xff]   ;;  %v1984_v24 = vld [vmem:[%s2705_s1 + $0x224] ss:$8 sps:$4 sm:$0xff]   ;;  %v1982_v27 = vld [vmem:[%s2705_s1 + $0x220] ss:$8 sps:$4 sm:$0xff]  }
  0x1f   :  { %827 = vmatpush1.bf16.msra.mxu0 %v1909_v30  ;;  %v2014_v25 = vld [vmem:[%s2706_s0 + $0x78] ss:$28 sps:$4 sm:$0xff]   ;;  %v2023_v29 = vld [vmem:[%s2706_s0 + $0xa8] ss:$28 sps:$4 sm:$0xff]  }
  0x20   :  { %828 = vmatprep.subr.bf16.mxu0 %v1913_v31  ;;  %900 = vmatpush1.bf16.msra.mxu1 %v1912_v32  ;;  %v2024_v26 = vld [vmem:[%s2706_s0 + $0xb4] ss:$28 sps:$4 sm:$0xff]   ;;  %v1990_v32 = vld [vmem:[%s2705_s1 + $0x204] ss:$8 sps:$4 sm:$0xff]  }
  0x21   :  { %901 = vmatprep.subr.bf16.mxu1 %v1916_v33  ;;  %v1987_v28 = vld [vmem:[%s2705_s1 + $0x214] ss:$8 sps:$4 sm:$0xff]   ;;  %v1985_v30 = vld [vmem:[%s2705_s1 + $0x210] ss:$8 sps:$4 sm:$0xff]  }
  0x22   :  { %v2039_v31 = vld [vmem:[%s2706_s0 + $0x14] ss:$28 sps:$4 sm:$0xff]  }
  0x23   :  { %829 = vmatpush2.bf16.msra.mxu0 %v1915_v34  ;;  %v2026_v33 = vld [vmem:[%s2706_s0 + $0xb0] ss:$28 sps:$4 sm:$0xff]   ;;  %v1988_v34 = vld [vmem:[%s2705_s1 + $0x200] ss:$8 sps:$4 sm:$0xff]   ;;  %v2032_v51 = vld [vmem:[%s2705_s1 + $0x294] ss:$8 sps:$4 sm:$0xff]  }
  0x24   :  { %830 = vmatprep.subr.bf16.mxu0 %v1919_v35  ;;  %902 = vmatpush2.bf16.msra.mxu1 %v1918_v36  ;;  %v1993_v35 = vld [vmem:[%s2705_s1 + $0x2f4] ss:$8 sps:$4 sm:$0xff]   ;;  %v2076_v36 = vmov 0   ;;  %v2018_v47 = vld [vmem:[%s2705_s1 + $0x2b0] ss:$8 sps:$4 sm:$0xff]  }
  0x25   :  { %903 = vmatprep.subr.bf16.mxu1 %v1922_v37  ;;  %v1991_v37 = vld [vmem:[%s2705_s1 + $0x2f0] ss:$8 sps:$4 sm:$0xff]  }
  0x27   :  { %831 = vmatpush2.bf16.msra.mxu0 %v1921_v38  ;;  %v2005_v38 = vld [vmem:[%s2705_s1 + $0x2e4] ss:$8 sps:$4 sm:$0xff]  }
  0x28   :  { %832 = vmatprep.subr.bf16.mxu0 %v1925_v39  ;;  %904 = vmatpush2.bf16.msra.mxu1 %v1924_v40  ;;  %v2036_v39 = vld [vmem:[%s2706_s0 + $0x18] ss:$28 sps:$4 sm:$0xff]   ;;  %v2003_v40 = vld [vmem:[%s2705_s1 + $0x2e0] ss:$8 sps:$4 sm:$0xff]  }
  0x29   :  { %905 = vmatprep.subr.bf16.mxu1 %v1928_v41  ;;  %v2008_v41 = vld [vmem:[%s2705_s1 + $0x2d4] ss:$8 sps:$4 sm:$0xff]  }
  0x2b   :  { %833 = vmatpush2.bf16.msra.mxu0 %v1927_v42  ;;  %v2006_v42 = vld [vmem:[%s2705_s1 + $0x2d0] ss:$8 sps:$4 sm:$0xff]  }
  0x2c   :  { %834 = vmatprep.subr.bf16.mxu0 %v1931_v43  ;;  %906 = vmatpush2.bf16.msra.mxu1 %v1930_v44  ;;  %v2017_v43 = vld [vmem:[%s2705_s1 + $0x2c4] ss:$8 sps:$4 sm:$0xff]  }
  0x2d   :  { %907 = vmatprep.subr.bf16.mxu1 %v1934_v45  ;;  %v2040_v44 = vld [vmem:[%s2706_s0 + $0x50] ss:$28 sps:$4 sm:$0xff]   ;;  %v2015_v45 = vld [vmem:[%s2705_s1 + $0x2c0] ss:$8 sps:$4 sm:$0xff]  }
  0x2f   :  { %835 = vmatpush2.bf16.msra.mxu0 %v1933_v46  ;;  %v2020_v46 = vld [vmem:[%s2705_s1 + $0x2b4] ss:$8 sps:$4 sm:$0xff]  }
  0x30   :  { %836 = vmatprep.subr.bf16.mxu0 %v1937_v48  ;;  %908 = vmatpush2.bf16.msra.mxu1 %v1936_v49  ;;  %v2029_v48 = vld [vmem:[%s2705_s1 + $0x2a4] ss:$8 sps:$4 sm:$0xff]  }
  0x31   :  { %909 = vmatprep.subr.bf16.mxu1 %v1940_v50  ;;  %v2044_v49 = vld [vmem:[%s2706_s0 + $0x88] ss:$28 sps:$4 sm:$0xff]  }
  0x32   :  { %v2027_v50 = vld [vmem:[%s2705_s1 + $0x2a0] ss:$8 sps:$4 sm:$0xff]  }
  0x33   :  { %837 = vmatpush2.bf16.msra.mxu0 %v1939_v52  ;;  %v2030_v52 = vld [vmem:[%s2705_s1 + $0x290] ss:$8 sps:$4 sm:$0xff]  }
  0x34   :  { %838 = vmatprep.subr.bf16.mxu0 %v1943_v53  ;;  %910 = vmatpush2.bf16.msra.mxu1 %v1942_v54  ;;  %v2035_v53 = vld [vmem:[%s2705_s1 + $0x284] ss:$8 sps:$4 sm:$0xff]   ;;  %v2048_v54 = vld [vmem:[%s2706_s0 + $0xc0] ss:$28 sps:$4 sm:$0xff]  }
  0x35   :  { %911 = vmatprep.subr.bf16.mxu1 %v1946_v55  ;;  %v2033_v55 = vld [vmem:[%s2705_s1 + $0x280] ss:$8 sps:$4 sm:$0xff]  }
  0x37   :  { %839 = vmatpush2.bf16.msra.mxu0 %v1945_v56  ;;  %v2037_v56 = vld [vmem:[%s2706_s0 + $0x10] ss:$28 sps:$4 sm:$0xff]  }
  0x38   :  { %840 = vmatprep.subr.bf16.mxu0 %v1949_v57  ;;  %912 = vmatpush2.bf16.msra.mxu1 %v1948_v58  ;;  %v2041_v57 = vld [vmem:[%s2706_s0 + $0x4c] ss:$28 sps:$4 sm:$0xff]  }
  0x39   :  { %913 = vmatprep.subr.bf16.mxu1 %v1952_v59  ;;  %v2043_v58 = vld [vmem:[%s2706_s0 + $0x48] ss:$28 sps:$4 sm:$0xff]  }
  0x3a   :  { %v2045_v59 = vld [vmem:[%s2706_s0 + $0x84] ss:$28 sps:$4 sm:$0xff]  }
  0x3b   :  { %841 = vmatpush2.bf16.msra.mxu0 %v1951_v60  ;;  %v2047_v60 = vld [vmem:[%s2706_s0 + $0x80] ss:$28 sps:$4 sm:$0xff]  }
  0x3c   :  { %842 = vmatprep.subr.bf16.mxu0 %v1955_v61  ;;  %914 = vmatpush2.bf16.msra.mxu1 %v1954_v62  ;;  %v2049_v61 = vld [vmem:[%s2706_s0 + $0xbc] ss:$28 sps:$4 sm:$0xff]  }
  0x3d   :  { %915 = vmatprep.subr.bf16.mxu1 %v1958_v63  ;;  %v2051_v62 = vld [vmem:[%s2706_s0 + $0xb8] ss:$28 sps:$4 sm:$0xff]  }
  0x3e   :  { %v2052_v63 = vld [vmem:[%s2707_s3 + $0x78] sm:$0xff]  }
  0x3f   :  { %843 = vmatpush2.bf16.msra.mxu0 %v1957_v0  ;;  %v2053_v0 = vld [vmem:[%s2707_s3 + $0x38] sm:$0xff]  }
  0x40   :  { %958 = vmatprep.subr.bf16.mxu0 %v1966_v3  ;;  %916 = vmatpush2.bf16.msra.mxu1 %v1963_v1  ;;  %v2054_v1 = vld [vmem:[%s2707_s3 + $0x70] sm:$0xff]   ;;  %v2056_v3 = vld [vmem:[%s2707_s3 + $0x68] sm:$0xff]  }
  0x41   :  { %1045 = vmatprep.subr.bf16.mxu1 %v1998_v6  ;;  %v2059_v6 = vld [vmem:[%s2707_s3 + $0x20] sm:$0xff]  }
  0x42   :  { %845 = vmatmul.mubr.bf16.vlgmr.msra.gmra.mxu0 %v1960_v2  ;;  %v2055_v2 = vld [vmem:[%s2707_s3 + $0x30] sm:$0xff]  }
  0x43   :  { %959 = vmatpush1.bf16.msra.mxu0 %v1964_v4  ;;  %854 = vmatprep.mubr.bf16.mxu0 %v1994_v8  ;;  %v2057_v4 = vld [vmem:[%s2707_s3 + $0x28] sm:$0xff]   ;;  %v2061_v8 = vld [vmem:[%s2707_s3 + $0x18] sm:$0xff]  }
  0x44   :  { %918 = vmatmul.mubr.bf16.vlgmr.msra.gmra.mxu1 %v1967_v5  ;;  %960 = vmatprep.subr.bf16.mxu0 %v1972_v7  ;;  %v2058_v5 = vld [vmem:[%s2707_s3 + $0x60] sm:$0xff]   ;;  %v2060_v7 = vld [vmem:[%s2707_s3 + $0x58] sm:$0xff]  }
  0x45   :  { %1046 = vmatpush1.bf16.msra.mxu1 %v1996_v9  ;;  %927 = vmatprep.mubr.bf16.mxu1 %v2000_v10  ;;  %v2062_v9 = vld [vmem:[%s2707_s3 + $0x50] sm:$0xff]  }
  0x46   :  { %1772 = vmatprep.subr.bf16.mxu1 %v2052_v63  ;;  %v2063_v10 = vld [vmem:[%s2707_s3 + $0x10] sm:$0xff]  }
  0x47   :  { %961 = vmatpush1.bf16.msra.mxu0 %v1970_v11  ;;  %v2064_v11 = vld [vmem:[%s2707_s3 + $0x48] sm:$0xff]  }
  0x48   :  { %962 = vmatprep.subr.bf16.mxu0 %v1975_v12  ;;  %v2065_v12 = vld [vmem:[%s2707_s3 + $0x8] sm:$0xff]  }
  0x4a   :  { %855 = vmatmul.mubr.bf16.gmra.mxu0 %v1999_v14  ;;  %v2067_v14 = vld [vmem:[%s2707_s3] sm:$0xff]  }
  0x4b   :  { %963 = vmatpush1.bf16.msra.mxu0 %v1973_v13  ;;  %864 = vmatprep.mubr.bf16.mxu0 %v2009_v16  ;;  %v2066_v13 = vld [vmem:[%s2707_s3 + $0x40] sm:$0xff]   ;;  %v2555_v16 = vld [vmem:[%s2708_s5 + $0x30] sm:$0xff]  }
  0x4c   :  { %964 = vmatprep.subr.bf16.mxu0 %v1978_v15  ;;  %928 = vmatmul.mubr.bf16.gmra.mxu1 %v2002_v17  ;;  %v2550_v15 = vld [vmem:[%s2708_s5 + $0x38] sm:$0xff]   ;;  %v2561_v17 = vld [vmem:[%s2708_s5 + $0x28] sm:$0xff]  }
  0x4d   :  { %937 = vmatprep.mubr.bf16.mxu1 %v2012_v18 }
  0x4f   :  { %965 = vmatpush1.bf16.msra.mxu0 %v1976_v19 }
  0x50   :  { %966 = vmatprep.subr.bf16.mxu0 %v1981_v20 }
  0x52   :  { %865 = vmatmul.mubr.bf16.gmra.mxu0 %v2011_v22 }
  0x53   :  { %967 = vmatpush1.bf16.msra.mxu0 %v1979_v21  ;;  %874 = vmatprep.mubr.bf16.mxu0 %v2021_v23 }
  0x54   :  { %968 = vmatprep.subr.bf16.mxu0 %v1984_v24  ;;  %938 = vmatmul.mubr.bf16.gmra.mxu1 %v2014_v25 }
  0x55   :  { %947 = vmatprep.mubr.bf16.mxu1 %v2024_v26 }
  0x57   :  { %969 = vmatpush1.bf16.msra.mxu0 %v1982_v27 }
  0x58   :  { %970 = vmatprep.subr.bf16.mxu0 %v1987_v28 }
  0x5a   :  { %875 = vmatmul.mubr.bf16.gmra.mxu0 %v2023_v29 }
  0x5b   :  { %971 = vmatpush1.bf16.msra.mxu0 %v1985_v30  ;;  %990 = vmatprep.mubr.bf16.mxu0 %v2039_v31 }
  0x5c   :  { %972 = vmatprep.subr.bf16.mxu0 %v1990_v32  ;;  %948 = vmatmul.mubr.bf16.gmra.mxu1 %v2026_v33 }
  0x5d   :  { %1063 = vmatprep.mubr.bf16.mxu1 %v2076_v36 }
  0x5f   :  { %973 = vmatpush1.bf16.msra.mxu0 %v1988_v34 }
  0x60   :  { %974 = vmatprep.subr.bf16.mxu0 %v1993_v35 }
  0x63   :  { %975 = vmatpush2.bf16.msra.mxu0 %v1991_v37 }
  0x64   :  { %976 = vmatprep.subr.bf16.mxu0 %v2005_v38  ;;  %1710 = vmatmul.mubr.msk.bf16.vlgmr.msra.gmra.mxu1 %vm799_vm0, %v2036_v39 }
  0x65   :  { %1073 = vmatprep.mubr.bf16.mxu1 %v2076_v36  ;;  %1773 = vmatpush3.bf16.msra.mxu1 %v2053_v0 }
  0x66   :  { %1774 = vmatprep.subr.bf16.mxu1 %v2054_v1 }
  0x67   :  { %977 = vmatpush2.bf16.msra.mxu0 %v2003_v40 }
  0x68   :  { %978 = vmatprep.subr.bf16.mxu0 %v2008_v41 }
  0x69   :  { %1775 = vmatpush3.bf16.msra.mxu1 %v2055_v2 }
  0x6a   :  { %1776 = vmatprep.subr.bf16.mxu1 %v2056_v3 }
  0x6b   :  { %979 = vmatpush2.bf16.msra.mxu0 %v2006_v42 }
  0x6c   :  { %980 = vmatprep.subr.bf16.mxu0 %v2017_v43  ;;  %1711 = vmatmul.mubr.msk.bf16.gmra.mxu1 %vm799_vm0, %v2040_v44 }
  0x6d   :  { %1083 = vmatprep.mubr.bf16.mxu1 %v2076_v36  ;;  %1777 = vmatpush3.bf16.msra.mxu1 %v2057_v4 }
  0x6e   :  { %1778 = vmatprep.subr.bf16.mxu1 %v2058_v5 }
  0x6f   :  { %981 = vmatpush2.bf16.msra.mxu0 %v2015_v45 }
  0x70   :  { %982 = vmatprep.subr.bf16.mxu0 %v2020_v46 }
  0x71   :  { %1779 = vmatpush3.bf16.msra.mxu1 %v2059_v6 }
  0x72   :  { %1780 = vmatprep.subr.bf16.mxu1 %v2060_v7 }
  0x73   :  { %983 = vmatpush2.bf16.msra.mxu0 %v2018_v47 }
  0x74   :  { %984 = vmatprep.subr.bf16.mxu0 %v2029_v48  ;;  %1712 = vmatmul.mubr.msk.bf16.gmra.mxu1 %vm799_vm0, %v2044_v49  ;;  %v159_v48 = vlaneseq }
  0x75   :  { %1093 = vmatprep.mubr.bf16.mxu1 %v2076_v36  ;;  %1781 = vmatpush3.bf16.msra.mxu1 %v2061_v8 }
  0x76   :  { %1782 = vmatprep.subr.bf16.mxu1 %v2062_v9 }
  0x77   :  { %985 = vmatpush2.bf16.msra.mxu0 %v2027_v50 }
  0x78   :  { %986 = vmatprep.subr.bf16.mxu0 %v2032_v51  ;;  %v160_v51 = vshrl.u32 %v159_v48, 7 }
  0x79   :  { %1783 = vmatpush3.bf16.msra.mxu1 %v2063_v10 }
  0x7a   :  { %1784 = vmatprep.subr.bf16.mxu1 %v2064_v11 }
  0x7b   :  { %987 = vmatpush2.bf16.msra.mxu0 %v2030_v52 }
  0x7c   :  { %988 = vmatprep.subr.bf16.mxu0 %v2035_v53  ;;  %1713 = vmatmul.mubr.msk.bf16.gmra.mxu1 %vm799_vm0, %v2048_v54  ;;  %v165_v54 = vsub.s32 1, %v160_v51 }
  0x7d   :  { %1785 = vmatpush3.bf16.msra.mxu1 %v2065_v12 }
  0x7e   :  { %1786 = vmatprep.subr.bf16.mxu1 %v2066_v13 }
  0x7f   :  { %989 = vmatpush2.bf16.msra.mxu0 %v2033_v55  ;;  %v157_v55 = vld [vmem:[%s2709_s2] sm:$0x3] }
  0x80   :  { %1824 = vmatprep.subr.bf16.mxu0 %v2550_v15 }
  0x81   :  { %1787 = vmatpush3.bf16.msra.mxu1 %v2067_v14 }
  0x82   :  { %991 = vmatmul.mubr.bf16.vlgmr.msra.gmra.mxu0 %v2037_v56  ;;  %1848 = vmatprep.subr.bf16.mxu1 %v2550_v15  ;;  %v161_v56 = vsub.s32 0, %v160_v51 }
  0x83   :  { %1000 = vmatprep.mubr.bf16.mxu0 %v2041_v57  ;;  %1825 = vmatpush3.bf16.msra.mxu0 %v2550_v15 }
  0x84   :  { %1826 = vmatprep.subr.bf16.mxu0 %v2555_v16 }
  0x87   :  { %1827 = vmatpush3.bf16.msra.mxu0 %v2555_v16 }
  0x88   :  { %1828 = vmatprep.subr.bf16.mxu0 %v2561_v17 }
  0x8a   :  { %1001 = vmatmul.mubr.bf16.gmra.mxu0 %v2043_v58 }
  0x8b   :  { %1010 = vmatprep.mubr.bf16.mxu0 %v2045_v59  ;;  %1829 = vmatpush3.bf16.msra.mxu0 %v2561_v17  ;;  %v2608_v59 = vrot.slane %v157_v55, %v165_v54 }
  0x92   :  { %1011 = vmatmul.mubr.bf16.gmra.mxu0 %v2047_v60  ;;  %v2610_v60 = vrot.slane %v157_v55, %v161_v56 }
  0x93   :  { %1020 = vmatprep.mubr.bf16.mxu0 %v2049_v61 }
  0x9a   :  { %1021 = vmatmul.mubr.bf16.gmra.mxu0 %v2051_v62 }
 0x102   :  { %v846_v19 = vpop.f32.mrf.mxu0 }
 0x103   :  { %v847_v0 = vadd.f32 %v846_v19, %v2610_v60 }
 0x104   :  { %v919_v18 = vpop.f32.mrf.mxu1  ;;  %v848_v22 = vpop.f32.mrf.mxu0 }
 0x105   :  { %v849_v63 = vadd.f32 %v848_v22, %v2608_v59  ;;  %v920_v7 = vadd.f32 %v919_v18, %v847_v0 }
 0x106   :  { %v921_v20 = vpop.f32.mrf.mxu1  ;;  %v850_v25 = vpop.f32.mrf.mxu0 }
 0x107   :  { %v851_v2 = vadd.f32 %v850_v25, %v2610_v60  ;;  %v922_v5 = vadd.f32 %v921_v20, %v849_v63 }
 0x108   :  { %v923_v21 = vpop.f32.mrf.mxu1  ;;  %v852_v28 = vpop.f32.mrf.mxu0 }
 0x109   :  { %v853_v6 = vadd.f32 %v852_v28, %v2608_v59  ;;  %v924_v9 = vadd.f32 %v923_v21, %v851_v2 }
 0x10a   :  { %v925_v23 = vpop.f32.mrf.mxu1  ;;  %v856_v30 = vpop.f32.mrf.mxu0 }
 0x10b   :  { %v926_v14 = vadd.f32 %v925_v23, %v853_v6  ;;  %v857_v48 = vadd.f32 %v856_v30, %v2610_v60 }
 0x10c   :  { %v2569_v24 = vpop.f32.mrf.mxu1  ;;  %v858_v33 = vpop.f32.mrf.mxu0 }
 0x10d   :  { %v859_v19 = vadd.f32 %v858_v33, %v2608_v59  ;;  %v930_v23 = vadd.f32 %v2569_v24, %v857_v48 }
 0x10e   :  { %v2571_v26 = vpop.f32.mrf.mxu1  ;;  %v860_v36 = vpop.f32.mrf.mxu0 }
 0x10f   :  { %v861_v51 = vadd.f32 %v860_v36, %v2610_v60  ;;  %v932_v56 = vadd.f32 %v2571_v26, %v859_v19 }
 0x110   :  { %v2573_v27 = vpop.f32.mrf.mxu1  ;;  %v862_v39 = vpop.f32.mrf.mxu0 }
 0x111   :  { %v863_v63 = vadd.f32 %v862_v39, %v2608_v59  ;;  %v934_v30 = vadd.f32 %v2573_v27, %v861_v51 }
 0x112   :  { %v2575_v29 = vpop.f32.mrf.mxu1  ;;  %v2593_v42 = vpop.f32.mrf.mxu0 }
 0x113   :  { %v867_v24 = vadd.f32 %v2593_v42, %v2610_v60 }
 0x114   :  { %v2577_v31 = vpop.f32.mrf.mxu1  ;;  %v868_v44 = vpop.f32.mrf.mxu0 }
 0x115   :  { %v869_v26 = vadd.f32 %v868_v44, %v2608_v59  ;;  %v940_v48 = vadd.f32 %v2577_v31, %v867_v24 }
 0x116   :  { %v2579_v32 = vpop.f32.mrf.mxu1  ;;  %v2595_v46 = vpop.f32.mrf.mxu0 }
 0x117   :  { %v871_v27 = vadd.f32 %v2595_v46, %v2610_v60  ;;  %v942_v44 = vadd.f32 %v2579_v32, %v869_v26 }
 0x118   :  { %v2581_v34 = vpop.f32.mrf.mxu1  ;;  %v2597_v49 = vpop.f32.mrf.mxu0 }
 0x11a   :  { %v2583_v35 = vpop.f32.mrf.mxu1  ;;  %v2599_v52 = vpop.f32.mrf.mxu0 }
 0x11c   :  { %v2585_v37 = vpop.f32.mrf.mxu1  ;;  %v2606_v57 = vpop.f32.mrf.mxu0 }
 0x11e   :  { %v2587_v38 = vpop.f32.mrf.mxu1  ;;  %v2612_v61 = vpop.f32.mrf.mxu0 }
 0x120   :  { %v2589_v40 = vpop.f32.mrf.mxu1  ;;  %v2616_v1 = vpop.f32.mrf.mxu0 }
 0x122   :  { %v2591_v41 = vpop.f32.mrf.mxu1 }
 0x124   :  { %v1065_v43 = vpop.f32.mrf.mxu1 }
 0x126   :  { %v1067_v45 = vpop.f32.mrf.mxu1 }
 0x128   :  { %v1069_v47 = vpop.f32.mrf.mxu1 }
 0x12a   :  { %v1071_v50 = vpop.f32.mrf.mxu1 }
 0x12c   :  { %v2601_v53 = vpop.f32.mrf.mxu1 }
 0x12e   :  { %v1077_v58 = vpop.f32.mrf.mxu1 }
 0x130   :  { %v1079_v62 = vpop.f32.mrf.mxu1 }
 0x132   :  { %v1081_v4 = vpop.f32.mrf.mxu1 }
 0x134   :  { %v2620_v13 = vpop.f32.mrf.mxu1 }
 0x136   :  { %v1087_v21 = vpop.f32.mrf.mxu1 }
 0x142   :  { %v992_v3 = vpop.f32.mrf.mxu0 }
 0x143   :  { %v993_v11 = vadd.f32 %v992_v3, %v920_v7  ;;  %v936_v7 = vadd.f32 %v2575_v29, %v863_v63 }
 0x144   :  { %v994_v8 = vpop.f32.mrf.mxu0 }
 0x145   :  { %v995_v10 = vadd.f32 %v994_v8, %v922_v5  ;;  %v1066_v18 = vadd.f32 %v1065_v43, %v993_v11  ;;  %v1089_v43 = vpop.f32.mrf.mxu1 }
 0x146   :  { %v996_v12 = vpop.f32.mrf.mxu0 }
 0x147   :  { %v997_v22 = vadd.f32 %v996_v12, %v924_v9  ;;  %v1068_v20 = vadd.f32 %v1067_v45, %v995_v10  ;;  %v1104_v45 = vmax.f32 %v1066_v18, 0.0  ;;  %v1091_v29 = vpop.f32.mrf.mxu1  ;;  %v877_v18 = vadd.f32 %v2599_v52, %v2610_v60 }
 0x148   :  { %v998_v25 = vpop.f32.mrf.mxu0  ;;  %v883_v52 = vadd.f32 %v2616_v1, %v2608_v59 }
 0x149   :  { %v1070_v54 = vadd.f32 %v1069_v47, %v997_v22  ;;  %v999_v28 = vadd.f32 %v998_v25, %v926_v14  ;;  %v1105_v3 = vmax.f32 %v1068_v20, 0.0  ;;  %v873_v22 = vadd.f32 %v2597_v49, %v2608_v59 }
 0x14a   :  { %v1002_v55 = vpop.f32.mrf.mxu0 }
 0x14b   :  { %v1072_v0 = vadd.f32 %v1071_v50, %v999_v28  ;;  %v1106_v33 = vmax.f32 %v1070_v54, 0.0  ;;  %v1003_v47 = vadd.f32 %v1002_v55, %v930_v23  ;;  %v1095_v28 = vpop.f32.mrf.mxu1  ;;  %v946_v49 = vadd.f32 %v2583_v35, %v873_v22 }
 0x14c   :  { %v1004_v2 = vpop.f32.mrf.mxu0 }
 0x14d   :  { %v1107_v5 = vmax.f32 %v1072_v0, 0.0  ;;  %v1005_v36 = vadd.f32 %v1004_v2, %v932_v56  ;;  %v1764_v50 = vpack.c.bf16 %v1106_v33, %v1104_v45  ;;  %v1076_v14 = vadd.f32 %v2601_v53, %v1003_v47  ;;  %v1097_v23 = vpop.f32.mrf.mxu1 }
 0x14e   :  { %v1006_v6 = vpop.f32.mrf.mxu0  ;;  %v881_v56 = vadd.f32 %v2612_v61, %v2610_v60 }
 0x14f   :  { %v1007_v8 = vadd.f32 %v1006_v6, %v934_v30  ;;  %v1765_v39 = vpack.c.bf16 %v1107_v5, %v1105_v3  ;;  %v1078_v10 = vadd.f32 %v1077_v58, %v1005_v36  ;;  %v1108_v20 = vmax.f32 %v1076_v14, 0.0  ;;  %v1099_v47 = vpop.f32.mrf.mxu1  ;;  %v2073_v14 = vld [vmem:[%s2708_s5 + $0x10] sm:$0xff]  }
 0x150   :  { %v1008_v9 = vpop.f32.mrf.mxu0  ;;  %v950_v30 = vadd.f32 %v2585_v37, %v877_v18 }
 0x151   :  { %v1080_v11 = vadd.f32 %v1079_v62, %v1007_v8  ;;  %v1009_v12 = vadd.f32 %v1008_v9, %v936_v7  ;;  %1391 = vmatprep.mubr.bf16.mxu1 %v1765_v39  ;;  %v944_v62 = vadd.f32 %v2581_v34, %v871_v27  ;;  %v1109_v53 = vmax.f32 %v1078_v10, 0.0  ;;  %v1101_v39 = vpop.f32.mrf.mxu1 }
 0x152   :  { %v1012_v19 = vpop.f32.mrf.mxu0  ;;  %1392 = vmatmul.mubr.bf16.vlgmr.msra.gmra.mxu1 %v1764_v50 }
 0x153   :  { %v1082_v42 = vadd.f32 %v1081_v4, %v1009_v12  ;;  %1856 = vmatpush3.bf16.msra.mxu1 %v2550_v15  ;;  %v1110_v46 = vmax.f32 %v1080_v11, 0.0  ;;  %v1013_v54 = vadd.f32 %v1012_v19, %v940_v48  ;;  %v879_v15 = vadd.f32 %v2606_v57, %v2608_v59  ;;  %v2072_v12 = vld [vmem:[%s2708_s5 + $0x18] sm:$0xff]   ;;  %v2074_v19 = vld [vmem:[%s2708_s5 + $0x8] sm:$0xff]   ;;  %v1722_v48 = vld [vmem:[%s2710_s4] ss:$0 sm:$0xff] }
 0x154   :  { %v1014_v58 = vpop.f32.mrf.mxu0  ;;  %1849 = vmatprep.subr.bf16.mxu1 %v2555_v16 }
 0x155   :  { %v1111_v25 = vmax.f32 %v1082_v42, 0.0  ;;  %v1015_v51 = vadd.f32 %v1014_v58, %v942_v44  ;;  %v1766_v55 = vpack.c.bf16 %v1110_v46, %v1108_v20  ;;  %v1086_v57 = vadd.f32 %v2620_v13, %v1013_v54 }
 0x156   :  { %v1016_v32 = vpop.f32.mrf.mxu0 }
 0x157   :  { %v1017_v4 = vadd.f32 %v1016_v32, %v944_v62  ;;  %v1767_v31 = vpack.c.bf16 %v1111_v25, %v1109_v53  ;;  %1857 = vmatpush3.bf16.msra.mxu1 %v2555_v16  ;;  %v1088_v63 = vadd.f32 %v1087_v21, %v1015_v51  ;;  %v952_v16 = vadd.f32 %v2587_v38, %v879_v15 }
 0x158   :  { %v1018_v34 = vpop.f32.mrf.mxu0  ;;  %1850 = vmatprep.subr.bf16.mxu1 %v2561_v17  ;;  %v954_v21 = vadd.f32 %v2589_v40, %v881_v56  ;;  %v1112_v36 = vmax.f32 %v1086_v57, 0.0  ;;  %v956_v38 = vadd.f32 %v2591_v41, %v883_v52  ;;  %v2071_v41 = vld [vmem:[%s2708_s5 + $0x20] sm:$0xff]  }
 0x159   :  { %v1090_v0 = vadd.f32 %v1089_v43, %v1017_v4  ;;  %v1019_v35 = vadd.f32 %v1018_v34, %v946_v49  ;;  %1399 = vmatprep.mubr.bf16.mxu1 %v1767_v31  ;;  %v1113_v3 = vmax.f32 %v1088_v63, 0.0  ;;  %1830 = vmatprep.subr.bf16.mxu0 %v2071_v41 }
 0x15a   :  { %v1022_v33 = vpop.f32.mrf.mxu0  ;;  %1400 = vmatmul.mubr.bf16.gmra.mxu1 %v1766_v55  ;;  %1831 = vmatpush3.bf16.msra.mxu0 %v2071_v41 }
 0x15b   :  { %v1092_v2 = vadd.f32 %v1091_v29, %v1019_v35  ;;  %1858 = vmatpush3.bf16.msra.mxu1 %v2561_v17  ;;  %v1114_v60 = vmax.f32 %v1090_v0, 0.0  ;;  %v1023_v45 = vadd.f32 %v1022_v33, %v950_v30  ;;  %1832 = vmatprep.subr.bf16.mxu0 %v2072_v12  ;;  %v2075_v29 = vld [vmem:[%s2708_s5] sm:$0xff]  }
 0x15c   :  { %v1024_v61 = vpop.f32.mrf.mxu0  ;;  %1851 = vmatprep.subr.bf16.mxu1 %v2071_v41 }
 0x15d   :  { %v1115_v5 = vmax.f32 %v1092_v2, 0.0  ;;  %v1025_v13 = vadd.f32 %v1024_v61, %v952_v16  ;;  %v1768_v7 = vpack.c.bf16 %v1114_v60, %v1112_v36  ;;  %v1096_v8 = vadd.f32 %v1095_v28, %v1023_v45 }
 0x15e   :  { %v1026_v6 = vpop.f32.mrf.mxu0  ;;  %1833 = vmatpush3.bf16.msra.mxu0 %v2072_v12 }
 0x15f   :  { %v1027_v43 = vadd.f32 %v1026_v6, %v954_v21  ;;  %v1769_v59 = vpack.c.bf16 %v1115_v5, %v1113_v3  ;;  %v1098_v17 = vadd.f32 %v1097_v23, %v1025_v13  ;;  %v1116_v27 = vmax.f32 %v1096_v8, 0.0  ;;  %1859 = vmatpush3.bf16.msra.mxu1 %v2071_v41  ;;  %1834 = vmatprep.subr.bf16.mxu0 %v2073_v14 }
 0x160   :  { %v1028_v1 = vpop.f32.mrf.mxu0  ;;  %1852 = vmatprep.subr.bf16.mxu1 %v2072_v12 }
 0x161   :  { %v1100_v26 = vadd.f32 %v1099_v47, %v1027_v43  ;;  %v1029_v37 = vadd.f32 %v1028_v1, %v956_v38  ;;  %1407 = vmatprep.mubr.bf16.mxu1 %v1769_v59  ;;  %v1117_v50 = vmax.f32 %v1098_v17, 0.0  ;;  %v1747_v1 = vld [vmem:[%s2711_s6] ss:$0 sm:$0xff] }
 0x162   :  { %1408 = vmatmul.mubr.bf16.gmra.mxu1 %v1768_v7  ;;  %1835 = vmatpush3.bf16.msra.mxu0 %v2073_v14 }
 0x163   :  { %v1102_v40 = vadd.f32 %v1101_v39, %v1029_v37  ;;  %v1118_v24 = vmax.f32 %v1100_v26, 0.0  ;;  %1860 = vmatpush3.bf16.msra.mxu1 %v2072_v12  ;;  %1836 = vmatprep.subr.bf16.mxu0 %v2074_v19 }
 0x164   :  { %1853 = vmatprep.subr.bf16.mxu1 %v2073_v14 }
 0x165   :  { %v1119_v9 = vmax.f32 %v1102_v40, 0.0  ;;  %v1770_v11 = vpack.c.bf16 %v1118_v24, %v1116_v27 }
 0x166   :  { %1837 = vmatpush3.bf16.msra.mxu0 %v2074_v19 }
 0x167   :  { %v1771_v10 = vpack.c.bf16 %v1119_v9, %v1117_v50  ;;  %1861 = vmatpush3.bf16.msra.mxu1 %v2073_v14  ;;  %1838 = vmatprep.subr.bf16.mxu0 %v2075_v29 }
 0x168   :  { %1854 = vmatprep.subr.bf16.mxu1 %v2074_v19 }
 0x169   :  { %1415 = vmatprep.mubr.bf16.mxu1 %v1771_v10 }
 0x16a   :  { %1416 = vmatmul.mubr.bf16.gmra.mxu1 %v1770_v11  ;;  %1839 = vmatpush3.bf16.msra.mxu0 %v2075_v29 }
 0x16b   :  { %1862 = vmatpush3.bf16.msra.mxu1 %v2074_v19 }
 0x16c   :  { %1855 = vmatprep.subr.bf16.mxu1 %v2075_v29 }
 0x16f   :  { %1863 = vmatpush3.bf16.msra.mxu1 %v2075_v29 }
 0x212   :  { %v1788_v44 = vpop.f32.mrf.mxu1 }
 0x214   :  { %v1789_v22 = vpop.f32.mrf.mxu1 }
 0x215   :  { %v1790_v42 = vadd.f32 %v1789_v22, %v1788_v44 }
 0x216   :  { %v1791_v46 = vpop.f32.mrf.mxu1 }
 0x217   :  { %v1394_v62 = vadd.f32 %v1790_v42, %v1722_v48 }
 0x218   :  { %v1792_v58 = vpop.f32.mrf.mxu1 }
 0x219   :  { %v1793_v53 = vadd.f32 %v1792_v58, %v1791_v46  ;;  %v1424_v54 = vmax.f32 %v1394_v62, 0.0 }
 0x21a   :  { %v1794_v25 = vpop.f32.mrf.mxu1 }
 0x21b   :  { %v1397_v51 = vadd.f32 %v1793_v53, %v1722_v48 }
 0x21c   :  { %v1795_v20 = vpop.f32.mrf.mxu1 }
 0x21d   :  { %v1425_v32 = vmax.f32 %v1397_v51, 0.0  ;;  %v1796_v28 = vadd.f32 %v1795_v20, %v1794_v25 }
 0x21e   :  { %v1797_v49 = vpop.f32.mrf.mxu1 }
 0x21f   :  { %v1432_v15 = vpack.c.bf16 %v1425_v32, %v1424_v54  ;;  %v1402_v31 = vadd.f32 %v1796_v28, %v1722_v48 }
 0x220   :  { %v1798_v4 = vpop.f32.mrf.mxu1 }
 0x221   :  { %v1799_v18 = vadd.f32 %v1798_v4, %v1797_v49  ;;  %1840 = vmatprep.mubr.bf16.mxu0 %v1432_v15  ;;  %v1426_v63 = vmax.f32 %v1402_v31, 0.0 }
 0x222   :  { %v1800_v34 = vpop.f32.mrf.mxu1 }
 0x223   :  { %v1405_v55 = vadd.f32 %v1799_v18, %v1722_v48 }
 0x224   :  { %v1801_v56 = vpop.f32.mrf.mxu1 }
 0x225   :  { %v1427_v0 = vmax.f32 %v1405_v55, 0.0  ;;  %v1802_v35 = vadd.f32 %v1801_v56, %v1800_v34 }
 0x226   :  { %v1803_v57 = vpop.f32.mrf.mxu1 }
 0x227   :  { %v1433_v23 = vpack.c.bf16 %v1427_v0, %v1426_v63  ;;  %v1410_v16 = vadd.f32 %v1802_v35, %v1722_v48 }
 0x228   :  { %v1804_v33 = vpop.f32.mrf.mxu1 }
 0x229   :  { %v1805_v52 = vadd.f32 %v1804_v33, %v1803_v57  ;;  %1841 = vmatmul.mubr.bf16.vlgmr.msra.gmra.mxu0 %v1433_v23  ;;  %v1428_v61 = vmax.f32 %v1410_v16, 0.0 }
 0x22a   :  { %v1806_v2 = vpop.f32.mrf.mxu1 }
 0x22b   :  { %v1413_v30 = vadd.f32 %v1805_v52, %v1722_v48 }
 0x22c   :  { %v1807_v60 = vpop.f32.mrf.mxu1 }
 0x22d   :  { %v1429_v21 = vmax.f32 %v1413_v30, 0.0  ;;  %v1808_v3 = vadd.f32 %v1807_v60, %v1806_v2 }
 0x22e   :  { %v1809_v5 = vpop.f32.mrf.mxu1 }
 0x22f   :  { %v1434_v13 = vpack.c.bf16 %v1429_v21, %v1428_v61  ;;  %v1418_v45 = vadd.f32 %v1808_v3, %v1722_v48 }
 0x230   :  { %v1810_v36 = vpop.f32.mrf.mxu1 }
 0x231   :  { %v1811_v47 = vadd.f32 %v1810_v36, %v1809_v5  ;;  %1844 = vmatprep.mubr.bf16.mxu1 %v1434_v13  ;;  %v1430_v38 = vmax.f32 %v1418_v45, 0.0 }
 0x233   :  { %v1421_v6 = vadd.f32 %v1811_v47, %v1722_v48 }
 0x235   :  { %v1431_v43 = vmax.f32 %v1421_v6, 0.0 }
 0x237   :  { %v1435_v59 = vpack.c.bf16 %v1431_v43, %v1430_v38 }
 0x239   :  { %1845 = vmatmul.mubr.bf16.vlgmr.msra.gmra.mxu1 %v1435_v59 }
 0x2e9   :  { %v1842_v7 = vpop.f32.mrf.mxu0 }
 0x2ea   :  { %v1550_v17 = vadd.f32 %v1842_v7, %v1747_v1 }
 0x2eb   :  { %v1541_v26 = vpop.f32.mrf.mxu0 }
 0x2ec   :  { %1574 = vst [vmem:[%s2712_s7 + $0x10] sm:$0xff] %v1550_v17  ;;  %v1542_v37 = vadd.f32 %v1747_v1, %v1541_v26 }
 0x2ed   :  { %v1843_v8 = vpop.f32.mrf.mxu0 }
 0x2ee   :  { %1572 = vst [vmem:[%s2712_s7] sm:$0xff] %v1542_v37  ;;  %v1553_v39 = vadd.f32 %v1843_v8, %v1747_v1 }
 0x2ef   :  { %v1544_v40 = vpop.f32.mrf.mxu0 }
 0x2f0   :  { %1575 = vst [vmem:[%s2712_s7 + $0x18] sm:$0xff] %v1553_v39  ;;  %v1545_v24 = vadd.f32 %v1747_v1, %v1544_v40 }
 0x2f2   :  { %1573 = vst [vmem:[%s2712_s7 + $0x8] sm:$0xff] %v1545_v24 }
 0x2f9   :  { %v1846_v50 = vpop.f32.mrf.mxu1 }
 0x2fa   :  { %v1566_v9 = vadd.f32 %v1846_v50, %v1747_v1 }
 0x2fb   :  { %v1557_v27 = vpop.f32.mrf.mxu1 }
 0x2fc   :  { %1578 = vst [vmem:[%s2712_s7 + $0x30] sm:$0xff] %v1566_v9  ;;  %v1558_v10 = vadd.f32 %v1747_v1, %v1557_v27 }
 0x2fd   :  { %v1847_v11 = vpop.f32.mrf.mxu1 }
 0x2fe   :  { %1576 = vst [vmem:[%s2712_s7 + $0x20] sm:$0xff] %v1558_v10  ;;  %v1569_v41 = vadd.f32 %v1847_v11, %v1747_v1 }
 0x2ff   :  { %v1560_v12 = vpop.f32.mrf.mxu1 }
 0x300   :  { %1579 = vst [vmem:[%s2712_s7 + $0x38] sm:$0xff] %v1569_v41  ;;  %v1561_v14 = vadd.f32 %v1747_v1, %v1560_v12 }
 0x302   :  { %1577 = vst [vmem:[%s2712_s7 + $0x28] sm:$0xff] %v1561_v14 }

</bundles_post_ra>
